<compile_context>
chip_gen: v6e
topology: v6e:2x2x1
jax: 0.10.0
libtpu: 0.0.40
codegen_flags: <defaults>
</compile_context>

<pallas_src>
import jax
import jax.numpy as jnp
from jax.experimental import pallas as pl
from jax.experimental.pallas import tpu as pltpu

LANES = 128
SUBLANES = 8
CHUNK_M = 256            # rows per in-kernel sub-chunk (128 KiB f32 per stream)
MULTI_BLOCK_M = 2048     # max rows per grid block (1 MiB f32 per stream)
SINGLE_BLOCK_MAX = 1024  # <= this many rows: one grid step, unchunked
PALLAS_MIN_ROWS = 256    # auto-dispatch: below this use plain JAX (launch dominates)

P1, B1 = 10.0, 0.6
P2, B2 = 10.0, 0.3


def _cdiv(a, b):
    return -(-a // b)


def _make_kernel(block_m, chunk_m, steps, valid_rows, ragged):
    """Build the partial-sums kernel for a fixed (static) tiling."""
    nchunks = block_m // chunk_m
    assert nchunks * chunk_m == block_m
    assert chunk_m % SUBLANES == 0

    def kernel(inter_ref, union_ref, tgt_ref, out_ref):
        # out_ref view: (1, 4, 8, 128)
        #   [0] sum t_A*inter   [1] sum t_A   [2] sum t_U*target   [3] sum target
        i = pl.program_id(1)

        @pl.when(i == 0)
        def _init():
            out_ref[...] = jnp.zeros_like(out_ref)

        if ragged:
            p = pl.program_id(0)
            base = (p * steps + i) * block_m
            row_iota = jax.lax.broadcasted_iota(jnp.int32, (chunk_m, LANES), 0)

        def accum(off, carry):
            a0, a1, a2, a3 = carry
            t = tgt_ref[pl.ds(off, chunk_m), :].astype(jnp.float32)
            x = inter_ref[pl.ds(off, chunk_m), :].astype(jnp.float32)
            u = union_ref[pl.ds(off, chunk_m), :].astype(jnp.float32)
            # sigmoid(z) == 0.5*(1 + tanh(z/2)): single EUP op per element.
            t_a = 0.5 * (1.0 + jnp.tanh((-0.5 * P1) * (t - B1)))
            t_u = 0.5 * (1.0 + jnp.tanh((-0.5 * P2) * (u - B2)))
            s0 = t_a * x
            s1 = t_a
            s2 = t_u * t
            s3 = t
            if ragged:
                # Mask rows past the valid extent (garbage in the OOB part of a
                # partial edge block must not contaminate any of the 4 sums).
                valid = (base + off + row_iota) < valid_rows
                s0 = jnp.where(valid, s0, 0.0)
                s1 = jnp.where(valid, s1, 0.0)
                s2 = jnp.where(valid, s2, 0.0)
                s3 = jnp.where(valid, s3, 0.0)

            def fold(v):
                # (chunk, 128) -> (chunk//8, 8, 128), reduce leading dim:
                # pure VPU adds, no per-chunk cross-lane (XLU) reduction.
                return jnp.sum(v.reshape(chunk_m // SUBLANES, SUBLANES, LANES), axis=0)

            return (a0 + fold(s0), a1 + fold(s1), a2 + fold(s2), a3 + fold(s3))

        zero8 = jnp.zeros((SUBLANES, LANES), jnp.float32)
        init = (zero8, zero8, zero8, zero8)
        if nchunks == 1:
            a0, a1, a2, a3 = accum(0, init)
        else:
            def body(c, carry):
                return accum(pl.multiple_of(c * chunk_m, chunk_m), carry)
            a0, a1, a2, a3 = jax.lax.fori_loop(0, nchunks, body, init, unroll=True)

        out_ref[0, 0] = out_ref[0, 0] + a0
        out_ref[0, 1] = out_ref[0, 1] + a1
        out_ref[0, 2] = out_ref[0, 2] + a2
        out_ref[0, 3] = out_ref[0, 3] + a3

    return kernel


def _loss_terms_jax(inter_f, union_f, tgt_f):
    """Pure-JAX path (exact sigmoid), used for tiny inputs and as reference."""
    t = tgt_f.astype(jnp.float32)
    x = inter_f.astype(jnp.float32)
    u = union_f.astype(jnp.float32)
    t_a = jax.nn.sigmoid(-P1 * (t - B1))
    t_u = jax.nn.sigmoid(-P2 * (u - B2))
    loss1 = -jnp.sum(t_a * x) / jnp.sum(t_a)
    loss2 = -jnp.sum(t_u * t) / jnp.sum(t)  # inf/NaN if sum(target)==0 (matches PyTorch)
    return loss1 + loss2, loss1, loss2


def _reference(inter, union, tgt):
    return _loss_terms_jax(inter.reshape(-1), union.reshape(-1), tgt.reshape(-1))[0]


def mha_loss(inter_input, union_input, target, use_pallas=None):
    """Pallas implementation of MHALoss.forward.

    Returns (loss, loss1, loss2) with loss = loss1 + loss2 (matches PyTorch).
    Inputs may be f32 or bf16 (the kernel upcasts on the VPU).
    """
    inter = jnp.asarray(inter_input)
    union = jnp.asarray(union_input)
    tgt = jnp.asarray(target)

    total = tgt.size
    assert inter.size == total and union.size == total, "inputs must match in size"

    inter_f = inter.reshape(-1)
    union_f = union.reshape(-1)
    tgt_f = tgt.reshape(-1)

    rows = total // LANES
    kernel_rows = (rows // SUBLANES) * SUBLANES       # rows the kernel handles
    kernel_elems = kernel_rows * LANES                # always a multiple of 1024

    if use_pallas is None:
        use_pallas = kernel_rows >= PALLAS_MIN_ROWS

    if (not use_pallas) or kernel_rows == 0:
        return _loss_terms_jax(inter_f, union_f, tgt_f)

    # --- choose tiling (all compile-time Python ints) ----------------------
    if kernel_rows <= SINGLE_BLOCK_MAX:
        block_m = kernel_rows                         # equals full array dim
        chunk_m = kernel_rows
        parts, steps = 1, 1
        ragged = False
    else:
        max_bm = min(MULTI_BLOCK_M, (kernel_rows // CHUNK_M) * CHUNK_M)
        block_m = max_bm
        # Prefer an even block count so the "parallel" leading axis can split
        # across the two v7x TensorCores (each part writes its own partial row).
        for bm in range(max_bm, CHUNK_M - 1, -CHUNK_M):
            if _cdiv(kernel_rows, bm) % 2 == 0:
                block_m = bm
                break
        chunk_m = CHUNK_M
        nblocks = _cdiv(kernel_rows, block_m)
        if nblocks % 2 == 0:
            parts, steps = 2, nblocks // 2
        else:
            parts, steps = 1, nblocks
        ragged = (parts * steps * block_m != kernel_rows)

    def to2d(x):
        if kernel_elems != total:
            # Rare case (total not a multiple of 1024): one bulk slice-copy; the
            # < 1024-element leftover is folded in with plain JAX below.
            x = x[:kernel_elems]
        return x.reshape(kernel_rows, LANES)          # free reshape when aligned

    inter2d = to2d(inter_f)
    union2d = to2d(union_f)
    tgt2d = to2d(tgt_f)

    kernel = _make_kernel(block_m, chunk_m, steps, kernel_rows, ragged)
    in_spec = pl.BlockSpec((block_m, LANES), lambda p, i: (p * steps + i, 0))

    partials = pl.pallas_call(
        kernel,
        out_shape=jax.ShapeDtypeStruct((parts, 4, SUBLANES, LANES), jnp.float32),
        grid_spec=pltpu.PrefetchScalarGridSpec(
            num_scalar_prefetch=0,
            grid=(parts, steps),
            in_specs=[in_spec, in_spec, in_spec],
            out_specs=pl.BlockSpec((1, 4, SUBLANES, LANES),
                                   lambda p, i: (p, 0, 0, 0)),
        ),
        compiler_params=pltpu.CompilerParams(
            dimension_semantics=("parallel", "arbitrary"),
            vmem_limit_bytes=32 * 1024 * 1024,
        ),
        cost_estimate=pl.CostEstimate(
            flops=12 * kernel_elems,
            transcendentals=2 * kernel_elems,
            bytes_accessed=3 * kernel_elems * inter2d.dtype.itemsize
                           + parts * 4 * SUBLANES * LANES * 4,
        ),
    )(inter2d, union2d, tgt2d)

    # Tiny (~8 KiB) JAX epilogue: combine per-part / per-lane partial sums.
    sums = jnp.sum(partials, axis=(0, 2, 3))          # (4,)
    s_ta_x, s_ta, s_tu_t, s_t = sums[0], sums[1], sums[2], sums[3]

    if kernel_elems != total:
        # Leftover elements that could not form full (8,128) rows (< 1024 elems).
        t_tail = tgt_f[kernel_elems:].astype(jnp.float32)
        x_tail = inter_f[kernel_elems:].astype(jnp.float32)
        u_tail = union_f[kernel_elems:].astype(jnp.float32)
        ta_tail = jax.nn.sigmoid(-P1 * (t_tail - B1))
        tu_tail = jax.nn.sigmoid(-P2 * (u_tail - B2))
        s_ta_x = s_ta_x + jnp.sum(ta_tail * x_tail)
        s_ta = s_ta + jnp.sum(ta_tail)
        s_tu_t = s_tu_t + jnp.sum(tu_tail * t_tail)
        s_t = s_t + jnp.sum(t_tail)

    loss1 = -s_ta_x / s_ta
    loss2 = -s_tu_t / s_t                 # inf/NaN if sum(target)==0 (matches PyTorch)
    return loss1 + loss2, loss1, loss2


if __name__ == "__main__":
    key = jax.random.PRNGKey(0)
    k1, k2, k3 = jax.random.split(key, 3)

    # Primary shape: attention maps (batch=2, heads=4, H=16, W=16), values in [0,1].
    shape = (2, 4, 16, 16)
    inter_input = jax.random.uniform(k1, shape, dtype=jnp.float32)
    union_input = jax.random.uniform(k2, shape, dtype=jnp.float32)
    target = jax.random.uniform(k3, shape, dtype=jnp.float32)

    loss, loss1, loss2 = mha_loss(inter_input, union_input, target, use_pallas=True)
    loss = jax.block_until_ready(loss)
    ref = _reference(inter_input, union_input, target)
    assert jnp.allclose(loss, ref, rtol=1e-5, atol=1e-5), (float(loss), float(ref))

    # Exercise the multi-block path (2-part parallel axis, chunked fori_loop,
    # ragged-last-block masking): rows = 1152.
    shape_big = (4, 4, 96, 96)
    kb1, kb2, kb3 = jax.random.split(jax.random.PRNGKey(1), 3)
    ib = jax.random.uniform(kb1, shape_big, dtype=jnp.float32)
    ub = jax.random.uniform(kb2, shape_big, dtype=jnp.float32)
    tb = jax.random.uniform(kb3, shape_big, dtype=jnp.float32)
    loss_b, _, _ = mha_loss(ib, ub, tb)               # auto path -> Pallas
    loss_b = jax.block_until_ready(loss_b)
    assert jnp.allclose(loss_b, _reference(ib, ub, tb), rtol=1e-5, atol=1e-5)

    # Exercise the unaligned-total path (leftover elements folded in JAX epilogue).
    shape_odd = (2, 4, 20, 20)                        # 3200 elems -> 24 kernel rows + tail
    ko1, ko2, ko3 = jax.random.split(jax.random.PRNGKey(2), 3)
    io = jax.random.uniform(ko1, shape_odd, dtype=jnp.float32)
    uo = jax.random.uniform(ko2, shape_odd, dtype=jnp.float32)
    to = jax.random.uniform(ko3, shape_odd, dtype=jnp.float32)
    loss_o, _, _ = mha_loss(io, uo, to, use_pallas=True)
    loss_o = jax.block_until_ready(loss_o)
    assert jnp.allclose(loss_o, _reference(io, uo, to), rtol=1e-5, atol=1e-5)

    print("intersection loss : ", float(loss1), "union loss : ", float(loss2))
    print("KERNEL_OK")
</pallas_src>

<mosaic_0001>
module attributes {stable_mosaic.version = 11 : i64} {
  func.func @kernel(%arg0: i32, %arg1: i32, %arg2: memref<16x128xf32, #tpu.memory_space<vmem>>, %arg3: memref<16x128xf32, #tpu.memory_space<vmem>>, %arg4: memref<16x128xf32, #tpu.memory_space<vmem>>, %arg5: memref<1x4x8x128xf32, #tpu.memory_space<vmem>>) attributes {dimension_semantics = [#tpu.dimension_semantics<parallel>, #tpu.dimension_semantics<arbitrary>], iteration_bounds = array<i64: 1, 1>, scalar_prefetch = 0 : i64, scratch_operands = 0 : i64, tpu.core_type = #tpu.core_type<tc>, window_params = [{transform_indices = @transform_0, window_bounds = array<i64: 16, 128>}, {transform_indices = @transform_1, window_bounds = array<i64: 16, 128>}, {transform_indices = @transform_2, window_bounds = array<i64: 16, 128>}, {transform_indices = @transform_3, window_bounds = array<i64: 1, 4, 8, 128>}]} {
    %c0_i32 = arith.constant 0 : i32
    %0 = arith.cmpi eq, %arg1, %c0_i32 : i32
    %1 = arith.extui %0 : i1 to i32
    %c0_i32_0 = arith.constant 0 : i32
    %2 = arith.cmpi ne, %1, %c0_i32_0 : i32
    scf.if %2 {
      %cst_47 = arith.constant 0.000000e+00 : f32
      %63 = vector.broadcast %cst_47 : f32 to vector<1x4x8x128xf32>
      %c0_48 = arith.constant 0 : index
      %c0_49 = arith.constant 0 : index
      %c0_50 = arith.constant 0 : index
      %c0_51 = arith.constant 0 : index
      %64 = vector.load %arg5[%c0_48, %c0_49, %c0_50, %c0_51] : memref<1x4x8x128xf32, #tpu.memory_space<vmem>>, vector<1x4x8x128xf32>
      tpu.vector_store %arg5[%c0_48, %c0_49, %c0_50, %c0_51], %63 {strides = array<i32>} : memref<1x4x8x128xf32, #tpu.memory_space<vmem>>, vector<1x4x8x128xf32>,
    } else {
    }
    %cst = arith.constant 0.000000e+00 : f32
    %3 = vector.broadcast %cst : f32 to vector<8x128xf32>
    %c0 = arith.constant 0 : index
    %c0_1 = arith.constant 0 : index
    %4 = vector.load %arg4[%c0, %c0_1] : memref<16x128xf32, #tpu.memory_space<vmem>>, vector<16x128xf32>
    %c0_2 = arith.constant 0 : index
    %c0_3 = arith.constant 0 : index
    %5 = vector.load %arg2[%c0_2, %c0_3] : memref<16x128xf32, #tpu.memory_space<vmem>>, vector<16x128xf32>
    %c0_4 = arith.constant 0 : index
    %c0_5 = arith.constant 0 : index
    %6 = vector.load %arg3[%c0_4, %c0_5] : memref<16x128xf32, #tpu.memory_space<vmem>>, vector<16x128xf32>
    %cst_6 = arith.constant 6.000000e-01 : f32
    %7 = vector.broadcast %cst_6 : f32 to vector<16x128xf32>
    %8 = arith.subf %4, %7 : vector<16x128xf32>
    %cst_7 = arith.constant -5.000000e+00 : f32
    %9 = vector.broadcast %cst_7 : f32 to vector<16x128xf32>
    %10 = arith.mulf %9, %8 : vector<16x128xf32>
    %11 = math.tanh %10 : vector<16x128xf32>
    %cst_8 = arith.constant 1.000000e+00 : f32
    %12 = vector.broadcast %cst_8 : f32 to vector<16x128xf32>
    %13 = arith.addf %12, %11 : vector<16x128xf32>
    %cst_9 = arith.constant 5.000000e-01 : f32
    %14 = vector.broadcast %cst_9 : f32 to vector<16x128xf32>
    %15 = arith.mulf %14, %13 : vector<16x128xf32>
    %cst_10 = arith.constant 3.000000e-01 : f32
    %16 = vector.broadcast %cst_10 : f32 to vector<16x128xf32>
    %17 = arith.subf %6, %16 : vector<16x128xf32>
    %cst_11 = arith.constant -5.000000e+00 : f32
    %18 = vector.broadcast %cst_11 : f32 to vector<16x128xf32>
    %19 = arith.mulf %18, %17 : vector<16x128xf32>
    %20 = math.tanh %19 : vector<16x128xf32>
    %cst_12 = arith.constant 1.000000e+00 : f32
    %21 = vector.broadcast %cst_12 : f32 to vector<16x128xf32>
    %22 = arith.addf %21, %20 : vector<16x128xf32>
    %cst_13 = arith.constant 5.000000e-01 : f32
    %23 = vector.broadcast %cst_13 : f32 to vector<16x128xf32>
    %24 = arith.mulf %23, %22 : vector<16x128xf32>
    %25 = arith.mulf %15, %5 : vector<16x128xf32>
    %26 = arith.mulf %24, %4 : vector<16x128xf32>
    %27 = vector.shape_cast %25 : vector<16x128xf32> to vector<2x8x128xf32>
    %cst_14 = arith.constant dense<0.000000e+00> : vector<8x128xf32>
    %28 = vector.multi_reduction <add>, %27, %cst_14 [0] : vector<2x8x128xf32> to vector<8x128xf32>
    %29 = arith.addf %3, %28 : vector<8x128xf32>
    %30 = vector.shape_cast %15 : vector<16x128xf32> to vector<2x8x128xf32>
    %cst_15 = arith.constant dense<0.000000e+00> : vector<8x128xf32>
    %31 = vector.multi_reduction <add>, %30, %cst_15 [0] : vector<2x8x128xf32> to vector<8x128xf32>
    %32 = arith.addf %3, %31 : vector<8x128xf32>
    %33 = vector.shape_cast %26 : vector<16x128xf32> to vector<2x8x128xf32>
    %cst_16 = arith.constant dense<0.000000e+00> : vector<8x128xf32>
    %34 = vector.multi_reduction <add>, %33, %cst_16 [0] : vector<2x8x128xf32> to vector<8x128xf32>
    %35 = arith.addf %3, %34 : vector<8x128xf32>
    %36 = vector.shape_cast %4 : vector<16x128xf32> to vector<2x8x128xf32>
    %cst_17 = arith.constant dense<0.000000e+00> : vector<8x128xf32>
    %37 = vector.multi_reduction <add>, %36, %cst_17 [0] : vector<2x8x128xf32> to vector<8x128xf32>
    %38 = arith.addf %3, %37 : vector<8x128xf32>
    %c0_18 = arith.constant 0 : index
    %c0_19 = arith.constant 0 : index
    %c0_20 = arith.constant 0 : index
    %c0_21 = arith.constant 0 : index
    %39 = vector.load %arg5[%c0_18, %c0_19, %c0_20, %c0_21] : memref<1x4x8x128xf32, #tpu.memory_space<vmem>>, vector<1x1x8x128xf32>
    %40 = vector.shape_cast %39 : vector<1x1x8x128xf32> to vector<8x128xf32>
    %41 = arith.addf %40, %29 : vector<8x128xf32>
    %c0_22 = arith.constant 0 : index
    %c0_23 = arith.constant 0 : index
    %c0_24 = arith.constant 0 : index
    %c0_25 = arith.constant 0 : index
    %42 = vector.load %arg5[%c0_22, %c0_23, %c0_24, %c0_25] : memref<1x4x8x128xf32, #tpu.memory_space<vmem>>, vector<1x1x8x128xf32>
    %43 = vector.shape_cast %42 : vector<1x1x8x128xf32> to vector<8x128xf32>
    %44 = vector.shape_cast %41 : vector<8x128xf32> to vector<1x1x8x128xf32>
    tpu.vector_store %arg5[%c0_22, %c0_23, %c0_24, %c0_25], %44 {strides = array<i32>} : memref<1x4x8x128xf32, #tpu.memory_space<vmem>>, vector<1x1x8x128xf32>,
    %c0_26 = arith.constant 0 : index
    %c1 = arith.constant 1 : index
    %c0_27 = arith.constant 0 : index
    %c0_28 = arith.constant 0 : index
    %45 = vector.load %arg5[%c0_26, %c1, %c0_27, %c0_28] : memref<1x4x8x128xf32, #tpu.memory_space<vmem>>, vector<1x1x8x128xf32>
    %46 = vector.shape_cast %45 : vector<1x1x8x128xf32> to vector<8x128xf32>
    %47 = arith.addf %46, %32 : vector<8x128xf32>
    %c0_29 = arith.constant 0 : index
    %c1_30 = arith.constant 1 : index
    %c0_31 = arith.constant 0 : index
    %c0_32 = arith.constant 0 : index
    %48 = vector.load %arg5[%c0_29, %c1_30, %c0_31, %c0_32] : memref<1x4x8x128xf32, #tpu.memory_space<vmem>>, vector<1x1x8x128xf32>
    %49 = vector.shape_cast %48 : vector<1x1x8x128xf32> to vector<8x128xf32>
    %50 = vector.shape_cast %47 : vector<8x128xf32> to vector<1x1x8x128xf32>
    tpu.vector_store %arg5[%c0_29, %c1_30, %c0_31, %c0_32], %50 {strides = array<i32>} : memref<1x4x8x128xf32, #tpu.memory_space<vmem>>, vector<1x1x8x128xf32>,
    %c0_33 = arith.constant 0 : index
    %c2 = arith.constant 2 : index
    %c0_34 = arith.constant 0 : index
    %c0_35 = arith.constant 0 : index
    %51 = vector.load %arg5[%c0_33, %c2, %c0_34, %c0_35] : memref<1x4x8x128xf32, #tpu.memory_space<vmem>>, vector<1x1x8x128xf32>
    %52 = vector.shape_cast %51 : vector<1x1x8x128xf32> to vector<8x128xf32>
    %53 = arith.addf %52, %35 : vector<8x128xf32>
    %c0_36 = arith.constant 0 : index
    %c2_37 = arith.constant 2 : index
    %c0_38 = arith.constant 0 : index
    %c0_39 = arith.constant 0 : index
    %54 = vector.load %arg5[%c0_36, %c2_37, %c0_38, %c0_39] : memref<1x4x8x128xf32, #tpu.memory_space<vmem>>, vector<1x1x8x128xf32>
    %55 = vector.shape_cast %54 : vector<1x1x8x128xf32> to vector<8x128xf32>
    %56 = vector.shape_cast %53 : vector<8x128xf32> to vector<1x1x8x128xf32>
    tpu.vector_store %arg5[%c0_36, %c2_37, %c0_38, %c0_39], %56 {strides = array<i32>} : memref<1x4x8x128xf32, #tpu.memory_space<vmem>>, vector<1x1x8x128xf32>,
    %c0_40 = arith.constant 0 : index
    %c3 = arith.constant 3 : index
    %c0_41 = arith.constant 0 : index
    %c0_42 = arith.constant 0 : index
    %57 = vector.load %arg5[%c0_40, %c3, %c0_41, %c0_42] : memref<1x4x8x128xf32, #tpu.memory_space<vmem>>, vector<1x1x8x128xf32>
    %58 = vector.shape_cast %57 : vector<1x1x8x128xf32> to vector<8x128xf32>
    %59 = arith.addf %58, %38 : vector<8x128xf32>
    %c0_43 = arith.constant 0 : index
    %c3_44 = arith.constant 3 : index
    %c0_45 = arith.constant 0 : index
    %c0_46 = arith.constant 0 : index
    %60 = vector.load %arg5[%c0_43, %c3_44, %c0_45, %c0_46] : memref<1x4x8x128xf32, #tpu.memory_space<vmem>>, vector<1x1x8x128xf32>
    %61 = vector.shape_cast %60 : vector<1x1x8x128xf32> to vector<8x128xf32>
    %62 = vector.shape_cast %59 : vector<8x128xf32> to vector<1x1x8x128xf32>
    tpu.vector_store %arg5[%c0_43, %c3_44, %c0_45, %c0_46], %62 {strides = array<i32>} : memref<1x4x8x128xf32, #tpu.memory_space<vmem>>, vector<1x1x8x128xf32>,
    return
  }
  func.func @transform_0(%arg0: i32, %arg1: i32) -> (i32, i32) {
    %c1_i32 = arith.constant 1 : i32
    %0 = arith.muli %arg0, %c1_i32 : i32
    %1 = arith.addi %0, %arg1 : i32
    %c0_i32 = arith.constant 0 : i32
    %c0_i32_0 = arith.constant 0 : i32
    return %1, %c0_i32 : i32, i32
  }
  func.func @transform_1(%arg0: i32, %arg1: i32) -> (i32, i32) {
    %c1_i32 = arith.constant 1 : i32
    %0 = arith.muli %arg0, %c1_i32 : i32
    %1 = arith.addi %0, %arg1 : i32
    %c0_i32 = arith.constant 0 : i32
    %c0_i32_0 = arith.constant 0 : i32
    return %1, %c0_i32 : i32, i32
  }
  func.func @transform_2(%arg0: i32, %arg1: i32) -> (i32, i32) {
    %c1_i32 = arith.constant 1 : i32
    %0 = arith.muli %arg0, %c1_i32 : i32
    %1 = arith.addi %0, %arg1 : i32
    %c0_i32 = arith.constant 0 : i32
    %c0_i32_0 = arith.constant 0 : i32
    return %1, %c0_i32 : i32, i32
  }
  func.func @transform_3(%arg0: i32, %arg1: i32) -> (i32, i32, i32, i32) {
    %c0_i32 = arith.constant 0 : i32
    %c0_i32_0 = arith.constant 0 : i32
    %c0_i32_1 = arith.constant 0 : i32
    %c0_i32_2 = arith.constant 0 : i32
    return %arg0, %c0_i32, %c0_i32_0, %c0_i32_1 : i32, i32, i32, i32
  }
}

</mosaic_0001>

<bundles_post_ra>
// kernel: tpu_custom_call.1
= control target key start
LH: loop header
LB: loop body
LE: loop exit
PB: predicated region body
PF: predicated region fallthrough
CT: control target
= control target key end

     0   :  { %8 = vsyncpa [#allocation3], 0  ;;  %s308_s0 = inlined_call_operand.hbm [shape: f32[16,128], index: 0, kind: input, shape index: {}]   ;;  %s309_s1 = inlined_call_operand.hbm [shape: f32[16,128], index: 1, kind: input, shape index: {}]   ;;  %s310_s2 = inlined_call_operand.hbm [shape: f32[16,128], index: 2, kind: input, shape index: {}]   ;;  %s311_s3 = inlined_call_operand.hbm [shape: f32[1,4,8,128], index: 3, kind: output, shape index: {}]  }
   0x1   :  { %9 = vsyncpa [#allocation6], 0 }
   0x2   :  { %10 = vsyncpa [#allocation4], 0  ;;  %s258_s12 = smov [#allocation5]   ;;  %s259_s14 = smov [#allocation2]  }
   0x3   :  { %s36_s13 = sshll.u32 %s258_s12, 4  ;;  %s20_s15 = sshll.u32 %s259_s14, 4  ;;  %s37_s13 = int_to_ptr.vmem [resolvable:$true] %s36_s13  ;;  %s21_s15 = int_to_ptr.vmem [resolvable:$true] %s20_s15 }
   0x4   :  { %s180_s16 = scalar_lea.vmem %s37_s13, 256  ;;  %p185_p1 = scmp.lt.s32.totalorder %s37_s13, %s37_s13 }
   0x5   :  { %p181_p0 = scmp.ne.s32.totalorder %s37_s13, %s180_s16  ;;  %p186_p2 = scmp.lt.s32.totalorder %s180_s16, %s180_s16 }
   0x7   :  { %p187_p3 = por %p186_p2, %p185_p1 }
   0x9   :  { %p188_p4 = pnand %p187_p3, %p181_p0 }
   0xb   :  { %191 = shalt.err (!%p188_p4)
}
   0xc   :  { %s260_s17 = smov 128   ;;  %s261_s18 = smov 8  }
   0xd   :  { %42 = dma.hbm_to_vmem [thread:$0]  %s309_s1, 256, %s37_s13, [#allocation6], %s260_s17, %s260_s17, %s261_s18  }
   0xe   :  { %s200_s21 = scalar_lea.vmem %s21_s15, 256  ;;  %p205_p6 = scmp.lt.s32.totalorder %s21_s15, %s21_s15 }
   0xf   :  { %p201_p5 = scmp.ne.s32.totalorder %s21_s15, %s200_s21  ;;  %p206_p7 = scmp.lt.s32.totalorder %s200_s21, %s200_s21 }
  0x11   :  { %p207_p8 = por %p206_p7, %p205_p6 }
  0x13   :  { %p208_p9 = pnand %p207_p8, %p201_p5 }
  0x15   :  { %211 = shalt.err (!%p208_p9)
}
  0x16   :  { %26 = dma.hbm_to_vmem [thread:$0]  %s308_s0, 256, %s21_s15, [#allocation3], %s260_s17, %s260_s17, %s261_s18  }
  0x17   :  { %s262_s24 = smov [#allocation7]  }
  0x18   :  { %s52_s25 = sshll.u32 %s262_s24, 4  ;;  %s53_s25 = int_to_ptr.vmem [resolvable:$true] %s52_s25 }
  0x19   :  { %s220_s26 = scalar_lea.vmem %s53_s25, 256  ;;  %p225_p11 = scmp.lt.s32.totalorder %s53_s25, %s53_s25 }
  0x1a   :  { %p221_p10 = scmp.ne.s32.totalorder %s53_s25, %s220_s26  ;;  %p226_p12 = scmp.lt.s32.totalorder %s220_s26, %s220_s26 }
  0x1c   :  { %p227_p13 = por %p226_p12, %p225_p11 }
  0x1e   :  { %p228_p0 = pnand %p227_p13, %p221_p10 }
  0x20   :  { %231 = shalt.err (!%p228_p0)
}
  0x21   :  { %58 = dma.hbm_to_vmem [thread:$0]  %s310_s2, 256, %s53_s25, [#allocation6], %s260_s17, %s260_s17, %s261_s18  }
  0x22   :  { %252 = dma.done.wait [#allocation3], 256  }
  0x23   :  { %253 = vsyncadd [#allocation3], 4294967040 }
  0x24   :  { %254 = dma.done.wait [#allocation6], 512  }
  0x25   :  { %255 = vsyncadd [#allocation6], 4294966784  ;;  %v82_v0 = vld [vmem:[#allocation7] sm:$0xff]  ;;  %v83_v1 = vld [vmem:[#allocation7 + $0x8] sm:$0xff]  ;;  %s263_s0 = smov [#allocation8]  }
  0x26   :  { %v153_v2 = vadd.f32 -0.6, %v82_v0  ;;  %v154_v3 = vadd.f32 -0.6, %v83_v1  ;;  %v86_v4 = vld [vmem:[#allocation5] sm:$0xff]  ;;  %v118_v5 = vadd.f32 %v83_v1, %v82_v0  ;;  %v87_v6 = vld [vmem:[#allocation5 + $0x8] sm:$0xff] }
  0x27   :  { %v155_v7 = vadd.f32 -0.3, %v86_v4  ;;  %v156_v10 = vadd.f32 -0.3, %v87_v6  ;;  %v84_v17 = vld [vmem:[#allocation2] sm:$0xff]  ;;  %v85_v20 = vld [vmem:[#allocation2 + $0x8] sm:$0xff] }
  0x28   :  { %v90_v8 = vmul.f32 -5.0, %v153_v2  ;;  %v91_v9 = vmul.f32 -5.0, %v154_v3  ;;  %134 = vst [vmem:[#allocation8 + $0x18] sm:$0xff] %v118_v5  ;;  %s140_s2 = sshll.u32 %s263_s0, 4  ;;  %s141_s2 = int_to_ptr.vmem [resolvable:$true] %s140_s2 }
  0x29   :  { %v100_v11 = vmul.f32 -5.0, %v155_v7  ;;  %v101_v12 = vmul.f32 -5.0, %v156_v10  ;;  %s232_s28 = scalar_lea.vmem %s141_s2, 512  ;;  %p237_p2 = scmp.lt.s32.totalorder %s141_s2, %s141_s2 }
  0x2a   :  { %164 = vtanh.f32 %v90_v8  ;;  %p233_p1 = scmp.ne.s32.totalorder %s141_s2, %s232_s28  ;;  %p238_p3 = scmp.lt.s32.totalorder %s232_s28, %s232_s28 }
  0x2b   :  { %166 = vtanh.f32 %v91_v9 }
  0x2c   :  { %168 = vtanh.f32 %v100_v11  ;;  %p239_p4 = por %p238_p3, %p237_p2 }
  0x2d   :  { %170 = vtanh.f32 %v101_v12 }
  0x2e   :  { %p240_p5 = pnand %p239_p4, %p233_p1 }
  0x37   :  { %v165_v13 = vpop.eup %164 }
  0x38   :  { %v167_v14 = vpop.eup %166  ;;  %v94_v15 = vadd.f32 1.0, %v165_v13 }
  0x39   :  { %v169_v16 = vpop.eup %168  ;;  %v95_v18 = vadd.f32 1.0, %v167_v14 }
  0x3a   :  { %v171_v19 = vpop.eup %170  ;;  %v96_v21 = vmul.f32 0.5, %v94_v15  ;;  %v104_v22 = vadd.f32 1.0, %v169_v16 }
  0x3b   :  { %v97_v23 = vmul.f32 0.5, %v95_v18  ;;  %v105_v24 = vadd.f32 1.0, %v171_v19 }
  0x3c   :  { %v108_v25 = vmul.f32 %v96_v21, %v84_v17  ;;  %v106_v26 = vmul.f32 0.5, %v104_v22 }
  0x3d   :  { %v109_v27 = vmul.f32 %v97_v23, %v85_v20  ;;  %v114_v28 = vadd.f32 %v97_v23, %v96_v21  ;;  %v107_v29 = vmul.f32 0.5, %v105_v24 }
  0x3e   :  { %v110_v30 = vmul.f32 %v106_v26, %v82_v0 }
  0x3f   :  { %v112_v31 = vadd.f32 %v109_v27, %v108_v25  ;;  %v111_v32 = vmul.f32 %v107_v29, %v83_v1  ;;  %126 = vst [vmem:[#allocation8 + $0x8] sm:$0xff] %v114_v28 }
  0x41   :  { %v116_v33 = vadd.f32 %v111_v32, %v110_v30  ;;  %122 = vst [vmem:[#allocation8] sm:$0xff] %v112_v31 }
  0x43   :  { %130 = vst [vmem:[#allocation8 + $0x10] sm:$0xff] %v116_v33 }
  0x44   :  { %243 = shalt.err (!%p240_p5)
}
  0x45   :  { %146 = dma.vmem_to_hbm [thread:$0]  %s141_s2, 512, %s311_s3, [#allocation4], %s260_s17, %s260_s17, %s261_s18  }
  0x46   :  { %256 = dma.done.wait [#allocation4], 512  }
  0x47   :  { %257 = vsyncadd [#allocation4], 4294966784 }
  0x48   :  { %150 = vsyncpa [#allocation3], 1 }
  0x49   :  { %151 = vsyncpa [#allocation6], 1 }
  0x4a   :  { %152 = vsyncpa [#allocation4], 1 }

</bundles_post_ra>
